<compile_context>
chip_gen: v5e
topology: v5e:2x2
jax: 0.10.0
libtpu: 0.0.40
codegen_flags: <defaults>
</compile_context>

<pallas_src>
import math

import jax
import jax.numpy as jnp
from jax.experimental import pallas as pl
from jax.experimental.pallas import tpu as pltpu


def _cdiv(a, b):
    return (a + b - 1) // b


def _round_up(a, b):
    return _cdiv(a, b) * b


# ---------------------------------------------------------------------------
# Kernels
# ---------------------------------------------------------------------------
def _ffn_resident_kernel(x_ref, w1_ref, b1_ref, w2_ref, b2_ref, o_ref):
    """Whole W1/W2 resident in VMEM; single grid axis over M (fully parallel)."""
    x = x_ref[...].astype(jnp.bfloat16)  # in-kernel cast: VPU work hidden under MXU
    h = jnp.dot(x, w1_ref[...], preferred_element_type=jnp.float32)
    h = jnp.maximum(h + b1_ref[...], 0.0)
    # TODO(synk): Dropout1d(p=0.2) is identity at inference; training-mode channel
    #             dropout (pltpu.prng_* based) is not implemented here.
    out = jnp.dot(h.astype(jnp.bfloat16), w2_ref[...],
                  preferred_element_type=jnp.float32)
    o_ref[...] = (out + b2_ref[...]).astype(o_ref.dtype)


def _ffn_tiled_kernel(x_ref, w1_ref, b1_ref, w2_ref, b2_ref, o_ref):
    """Fallback when W1/W2 exceed the VMEM budget: tile the hidden dim and
    accumulate partial GEMM2 products directly into the resident f32 output."""
    j = pl.program_id(1)  # hidden-dimension tile index (reduction axis, last)

    x = x_ref[...].astype(jnp.bfloat16)
    h = jnp.dot(x, w1_ref[...], preferred_element_type=jnp.float32)
    h = jnp.maximum(h + b1_ref[...], 0.0)
    part = jnp.dot(h.astype(jnp.bfloat16), w2_ref[...],
                   preferred_element_type=jnp.float32)

    @pl.when(j == 0)
    def _():
        o_ref[...] = part + b2_ref[...]

    @pl.when(j != 0)
    def _():
        o_ref[...] += part


# ---------------------------------------------------------------------------
# Tile selection
# ---------------------------------------------------------------------------
def _choose_tm(M, tile_m):
    m8 = _round_up(max(M, 8), 8)
    tm = min(_round_up(tile_m, 8), m8)
    # v7x has 2 TensorCores per chip: ensure the "parallel" M axis spans >= 2
    # tiles whenever there is enough work to be worth splitting.
    if m8 > 256 and _cdiv(m8, tm) < 2:
        tm = _round_up(_cdiv(m8, 2), 8)
    return tm


def _pick_th(hid, tile_h):
    """Largest 128-multiple tile <= tile_h dividing hid; else full extent."""
    for t in (tile_h, 1024, 512, 256, 128):
        if 0 < t <= hid and hid % t == 0 and t % 128 == 0:
            return t
    return hid


# ---------------------------------------------------------------------------
# One-time parameter preparation (init-time, NOT per forward):
#   * pad in_features up to a multiple of 128 (lane-dense output stores)
#   * cast weights to bf16 once (no per-call HBM cast passes)
# ---------------------------------------------------------------------------
def prepare_params(params):
    w1 = params["w1"]
    fin, hid = w1.shape
    fin_p = _round_up(fin, 128)
    pad = fin_p - fin
    w1p = jnp.pad(w1, ((0, pad), (0, 0))) if pad else w1
    w2p = jnp.pad(params["w2"], ((0, 0), (0, pad))) if pad else params["w2"]
    b2p = jnp.pad(params["b2"], (0, pad)) if pad else params["b2"]
    return {
        "w1": w1p.astype(jnp.bfloat16),                      # (Fin_p, Hid)
        "b1": params["b1"].reshape(1, hid).astype(jnp.float32),
        "w2": w2p.astype(jnp.bfloat16),                      # (Hid, Fin_p)
        "b2": b2p.reshape(1, fin_p).astype(jnp.float32),
        "in_features": fin,
    }


# ---------------------------------------------------------------------------
# Wrapper
# ---------------------------------------------------------------------------
def feed_forward(x, prepared, *, tile_m=512, tile_h=512,
                 resident_weight_budget=8 * 1024 * 1024):
    """x: (B, S, Fin) -> (B, S, Fin). Mirrors FeedForward.forward (conv=False)."""
    B, S, fin = x.shape
    assert fin == prepared["in_features"]
    fin_p, hid = prepared["w1"].shape
    M = B * S

    tm = _choose_tm(M, tile_m)
    m_p = tm * _cdiv(M, tm)

    x2d = x.reshape(M, fin)
    if m_p != M or fin_p != fin:
        x2d = jnp.pad(x2d, ((0, m_p - M), (0, fin_p - fin)))

    weight_bytes = 2 * fin_p * hid * 2  # W1 + W2 in bf16
    resident = weight_bytes <= resident_weight_budget

    if resident:
        th = hid
        grid = (m_p // tm,)
        kernel = _ffn_resident_kernel
        in_specs = [
            pl.BlockSpec((tm, fin_p), lambda i: (i, 0)),    # x row tile
            pl.BlockSpec((fin_p, hid), lambda i: (0, 0)),   # W1 (resident)
            pl.BlockSpec((1, hid), lambda i: (0, 0)),       # b1 (resident)
            pl.BlockSpec((hid, fin_p), lambda i: (0, 0)),   # W2 (resident)
            pl.BlockSpec((1, fin_p), lambda i: (0, 0)),     # b2 (resident)
        ]
        out_spec = pl.BlockSpec((tm, fin_p), lambda i: (i, 0))
        dims = ("parallel",)
        weight_streams = 1
    else:
        th = _pick_th(hid, tile_h)
        grid = (m_p // tm, hid // th)
        kernel = _ffn_tiled_kernel
        in_specs = [
            pl.BlockSpec((tm, fin_p), lambda i, j: (i, 0)),  # x row tile
            pl.BlockSpec((fin_p, th), lambda i, j: (0, j)),  # W1 column tile
            pl.BlockSpec((1, th), lambda i, j: (0, j)),      # b1 tile
            pl.BlockSpec((th, fin_p), lambda i, j: (j, 0)),  # W2 row tile
            pl.BlockSpec((1, fin_p), lambda i, j: (0, 0)),   # b2
        ]
        out_spec = pl.BlockSpec((tm, fin_p), lambda i, j: (i, 0))
        dims = ("parallel", "arbitrary")
        weight_streams = m_p // tm  # weights re-streamed once per M tile

    # Generous double-buffered per-step working set -> explicit VMEM limit
    # (capped at v7x's 64 MiB physical VMEM).
    ws = (2 * tm * fin_p * 4        # x input buffers (f32)
          + 2 * fin_p * th * 2      # W1 buffers (bf16)
          + 2 * th * fin_p * 2      # W2 buffers (bf16)
          + 2 * th * 4 + 2 * fin_p * 4
          + 2 * tm * fin_p * 4      # output buffers (f32)
          + 2 * tm * th * 4)        # hidden-activation temporaries
    vmem_limit = min(max(int(1.5 * ws), 32 * 1024 * 1024), 64 * 1024 * 1024)

    flops = 4 * m_p * hid * fin_p  # two GEMMs, 2*M*N*K each
    bytes_accessed = (
        m_p * fin_p * 4                     # x read (f32)
        + weight_streams * weight_bytes     # weight traffic (re-streamed iff tiled)
        + hid * 4 + fin_p * 4               # biases
        + m_p * fin_p * 4                   # output write (f32)
    )

    out2d = pl.pallas_call(
        kernel,
        out_shape=jax.ShapeDtypeStruct((m_p, fin_p), jnp.float32),
        grid=grid,
        in_specs=in_specs,
        out_specs=out_spec,
        compiler_params=pltpu.CompilerParams(
            dimension_semantics=dims,
            vmem_limit_bytes=vmem_limit,
        ),
        cost_estimate=pl.CostEstimate(
            flops=flops, transcendentals=0, bytes_accessed=bytes_accessed),
    )(x2d, prepared["w1"], prepared["b1"], prepared["w2"], prepared["b2"])

    return out2d[:M, :fin].reshape(B, S, fin)


# ---------------------------------------------------------------------------
# Deterministic parameter init (mimics nn.Linear uniform(-1/sqrt(fan_in), +)).
# Weights are stored transposed (in, out) so the kernels compute x @ W^T + b.
# ---------------------------------------------------------------------------
def init_params(key, in_features, hid_features):
    k1, k2, k3, k4 = jax.random.split(key, 4)
    bound1 = 1.0 / math.sqrt(in_features)   # layer1 fan_in
    bound2 = 1.0 / math.sqrt(hid_features)  # layer2 fan_in
    return {
        "w1": jax.random.uniform(k1, (in_features, hid_features),
                                 minval=-bound1, maxval=bound1, dtype=jnp.float32),
        "b1": jax.random.uniform(k2, (hid_features,),
                                 minval=-bound1, maxval=bound1, dtype=jnp.float32),
        "w2": jax.random.uniform(k3, (hid_features, in_features),
                                 minval=-bound2, maxval=bound2, dtype=jnp.float32),
        "b2": jax.random.uniform(k4, (in_features,),
                                 minval=-bound2, maxval=bound2, dtype=jnp.float32),
    }


# ---------------------------------------------------------------------------
# Pure-JAX references for verification
# ---------------------------------------------------------------------------
def reference_forward_f32(x, params):
    h = jnp.maximum(x @ params["w1"] + params["b1"], 0.0)
    return h @ params["w2"] + params["b2"]


def reference_forward_bf16(x, params):
    # Same bf16-operand / f32-accumulation recipe as the kernels.
    B, S, fin = x.shape
    xb = x.reshape(B * S, fin).astype(jnp.bfloat16)
    h = jnp.dot(xb, params["w1"].astype(jnp.bfloat16),
                preferred_element_type=jnp.float32) + params["b1"]
    h = jnp.maximum(h, 0.0).astype(jnp.bfloat16)
    out = jnp.dot(h, params["w2"].astype(jnp.bfloat16),
                  preferred_element_type=jnp.float32) + params["b2"]
    return out.reshape(B, S, fin)


if __name__ == "__main__":
    batch, seq_len, in_features, hid_features = 2, 8, 32, 256

    key = jax.random.PRNGKey(0)
    kx, kp = jax.random.split(key)
    x = jax.random.normal(kx, (batch, seq_len, in_features), dtype=jnp.float32)
    params = init_params(kp, in_features, hid_features)
    prepared = prepare_params(params)  # one-time bf16 cast + lane padding

    # Default: resident-weights path (bf16 W1/W2 fit VMEM -> single M grid axis).
    out = jax.block_until_ready(feed_forward(x, prepared))
    assert out.shape == (batch, seq_len, in_features)

    # Also exercise the hidden-tiled fallback (accumulation / pl.when branches)
    # by forcing a zero residency budget and a small hidden tile.
    out_tiled = jax.block_until_ready(
        feed_forward(x, prepared, tile_h=128, resident_weight_budget=0))
    assert out_tiled.shape == (batch, seq_len, in_features)

    ref_bf16 = reference_forward_bf16(x, params)
    ref_f32 = reference_forward_f32(x, params)
    for o in (out, out_tiled):
        assert jnp.allclose(o, ref_bf16, atol=2e-3, rtol=2e-3), "mismatch vs bf16 reference"
        assert jnp.allclose(o, ref_f32, atol=5e-2, rtol=5e-2), "mismatch vs f32 reference"

    print("KERNEL_OK")
</pallas_src>

<mosaic_0001>
module attributes {stable_mosaic.version = 11 : i64} {
  func.func @_ffn_resident_kernel(%arg0: i32, %arg1: memref<16x128xf32, #tpu.memory_space<vmem>>, %arg2: memref<128x256xbf16, #tpu.memory_space<vmem>>, %arg3: memref<1x256xf32, #tpu.memory_space<vmem>>, %arg4: memref<256x128xbf16, #tpu.memory_space<vmem>>, %arg5: memref<1x128xf32, #tpu.memory_space<vmem>>, %arg6: memref<16x128xf32, #tpu.memory_space<vmem>>) attributes {dimension_semantics = [#tpu.dimension_semantics<parallel>], iteration_bounds = array<i64: 1>, scalar_prefetch = 0 : i64, scratch_operands = 0 : i64, tpu.core_type = #tpu.core_type<tc>, window_params = [{transform_indices = @transform_0, window_bounds = array<i64: 16, 128>}, {pipeline_mode = #tpu.pipeline_mode<synchronous>, transform_indices = @transform_1, window_bounds = array<i64: 128, 256>}, {pipeline_mode = #tpu.pipeline_mode<synchronous>, transform_indices = @transform_2, window_bounds = array<i64: 1, 256>}, {pipeline_mode = #tpu.pipeline_mode<synchronous>, transform_indices = @transform_3, window_bounds = array<i64: 256, 128>}, {pipeline_mode = #tpu.pipeline_mode<synchronous>, transform_indices = @transform_4, window_bounds = array<i64: 1, 128>}, {transform_indices = @transform_5, window_bounds = array<i64: 16, 128>}]} {
    %c0 = arith.constant 0 : index
    %c0_0 = arith.constant 0 : index
    %0 = vector.load %arg1[%c0, %c0_0] : memref<16x128xf32, #tpu.memory_space<vmem>>, vector<16x128xf32>
    %1 = arith.truncf %0 : vector<16x128xf32> to vector<16x128xbf16>
    %c0_1 = arith.constant 0 : index
    %c0_2 = arith.constant 0 : index
    %2 = vector.load %arg2[%c0_1, %c0_2] : memref<128x256xbf16, #tpu.memory_space<vmem>>, vector<128x256xbf16>
    %cst = arith.constant dense<0.000000e+00> : vector<16x256xf32>
    %3 = tpu.matmul %1, %2, %cst {dimension_numbers = #tpu.dot_dimension_numbers<[1], [0], [0], [1], [0, 0, 1, 1], [], []>} : vector<16x128xbf16>, vector<128x256xbf16>, vector<16x256xf32> -> vector<16x256xf32>
    %c0_3 = arith.constant 0 : index
    %c0_4 = arith.constant 0 : index
    %4 = vector.load %arg3[%c0_3, %c0_4] : memref<1x256xf32, #tpu.memory_space<vmem>>, vector<1x256xf32>
    %5 = vector.broadcast %4 : vector<1x256xf32> to vector<16x256xf32>
    %6 = arith.addf %3, %5 : vector<16x256xf32>
    %cst_5 = arith.constant 0.000000e+00 : f32
    %7 = vector.broadcast %cst_5 : f32 to vector<16x256xf32>
    %8 = arith.maximumf %6, %7 : vector<16x256xf32>
    %9 = arith.truncf %8 : vector<16x256xf32> to vector<16x256xbf16>
    %c0_6 = arith.constant 0 : index
    %c0_7 = arith.constant 0 : index
    %10 = vector.load %arg4[%c0_6, %c0_7] : memref<256x128xbf16, #tpu.memory_space<vmem>>, vector<256x128xbf16>
    %cst_8 = arith.constant dense<0.000000e+00> : vector<16x128xf32>
    %11 = tpu.matmul %9, %10, %cst_8 {dimension_numbers = #tpu.dot_dimension_numbers<[1], [0], [0], [1], [0, 0, 1, 1], [], []>} : vector<16x256xbf16>, vector<256x128xbf16>, vector<16x128xf32> -> vector<16x128xf32>
    %c0_9 = arith.constant 0 : index
    %c0_10 = arith.constant 0 : index
    %12 = vector.load %arg5[%c0_9, %c0_10] : memref<1x128xf32, #tpu.memory_space<vmem>>, vector<1x128xf32>
    %13 = vector.broadcast %12 : vector<1x128xf32> to vector<16x128xf32>
    %14 = arith.addf %11, %13 : vector<16x128xf32>
    %c0_11 = arith.constant 0 : index
    %c0_12 = arith.constant 0 : index
    %15 = vector.load %arg6[%c0_11, %c0_12] : memref<16x128xf32, #tpu.memory_space<vmem>>, vector<16x128xf32>
    tpu.vector_store %arg6[%c0_11, %c0_12], %14 {strides = array<i32>} : memref<16x128xf32, #tpu.memory_space<vmem>>, vector<16x128xf32>,
    return
  }
  func.func @transform_0(%arg0: i32) -> (i32, i32) {
    %c0_i32 = arith.constant 0 : i32
    %c0_i32_0 = arith.constant 0 : i32
    return %arg0, %c0_i32 : i32, i32
  }
  func.func @transform_1(%arg0: i32) -> (i32, i32) {
    %c0_i32 = arith.constant 0 : i32
    %c0_i32_0 = arith.constant 0 : i32
    %c0_i32_1 = arith.constant 0 : i32
    return %c0_i32, %c0_i32_0 : i32, i32
  }
  func.func @transform_2(%arg0: i32) -> (i32, i32) {
    %c0_i32 = arith.constant 0 : i32
    %c0_i32_0 = arith.constant 0 : i32
    %c0_i32_1 = arith.constant 0 : i32
    return %c0_i32, %c0_i32_0 : i32, i32
  }
  func.func @transform_3(%arg0: i32) -> (i32, i32) {
    %c0_i32 = arith.constant 0 : i32
    %c0_i32_0 = arith.constant 0 : i32
    %c0_i32_1 = arith.constant 0 : i32
    return %c0_i32, %c0_i32_0 : i32, i32
  }
  func.func @transform_4(%arg0: i32) -> (i32, i32) {
    %c0_i32 = arith.constant 0 : i32
    %c0_i32_0 = arith.constant 0 : i32
    %c0_i32_1 = arith.constant 0 : i32
    return %c0_i32, %c0_i32_0 : i32, i32
  }
  func.func @transform_5(%arg0: i32) -> (i32, i32) {
    %c0_i32 = arith.constant 0 : i32
    %c0_i32_0 = arith.constant 0 : i32
    return %arg0, %c0_i32 : i32, i32
  }
}

</mosaic_0001>

<bundles_post_ra>
// kernel: tpu_custom_call.1
= control target key start
LH: loop header
LB: loop body
LE: loop exit
PB: predicated region body
PF: predicated region fallthrough
CT: control target
= control target key end

     0   :  { %10 = vsyncpa [#allocation3], 0  ;;  %s768_s0 = inlined_call_operand.hbm [shape: f32[16,128], index: 0, kind: input, shape index: {}]   ;;  %s769_s1 = inlined_call_operand.hbm [shape: bf16[128,256], index: 1, kind: input, shape index: {}]   ;;  %s770_s2 = inlined_call_operand.hbm [shape: f32[1,256], index: 2, kind: input, shape index: {}]   ;;  %s771_s3 = inlined_call_operand.hbm [shape: bf16[256,128], index: 3, kind: input, shape index: {}]   ;;  %s772_s4 = inlined_call_operand.vmem [shape: f32[1,128], index: 4, kind: input, shape index: {}]   ;;  %s773_s5 = inlined_call_operand.hbm [shape: f32[16,128], index: 5, kind: output, shape index: {}]  }
   0x1   :  { %11 = vsyncpa [#allocation6], 0 }
   0x2   :  { %12 = vsyncpa [#allocation9], 0 }
   0x3   :  { %13 = vsyncpa [#allocation4], 0  ;;  %s31_s20 = sshll.u32 %s769_s1, 4  ;;  %s702_s21 = smov [#allocation5]   ;;  %s32_s20 = int_to_ptr.hbm [resolvable:$true] %s31_s20 }
   0x4   :  { %s33_s22 = sshll.u32 %s702_s21, 4  ;;  %s18_s25 = sshll.u32 %s768_s0, 4  ;;  %s34_s22 = int_to_ptr.vmem [resolvable:$true] %s33_s22  ;;  %s19_s25 = int_to_ptr.hbm [resolvable:$true] %s18_s25 }
   0x5   :  { %s703_s26 = smov 128   ;;  %s704_s27 = smov 8  }
   0x6   :  { %39 = dma.hbm_to_vmem [thread:$0]  %s32_s20, 2048, %s34_s22, [#allocation6], %s703_s26, %s703_s26, %s704_s27  }
   0x7   :  { %s705_s28 = smov [#allocation2]   ;;  %s45_s1 = sshll.u32 %s770_s2, 4  ;;  %s46_s1 = int_to_ptr.hbm [resolvable:$true] %s45_s1 }
   0x8   :  { %s20_s29 = sshll.u32 %s705_s28, 4  ;;  %s55_s8 = sshll.u32 %s771_s3, 4  ;;  %s21_s29 = int_to_ptr.vmem [resolvable:$true] %s20_s29  ;;  %s56_s8 = int_to_ptr.hbm [resolvable:$true] %s55_s8 }
   0x9   :  { %26 = dma.hbm_to_vmem [thread:$0]  %s19_s25, 256, %s21_s29, [#allocation3], %s703_s26, %s703_s26, %s704_s27  }
   0xa   :  { %s706_s9 = smov [#allocation7]   ;;  %s707_s11 = smov [#allocation8]  }
   0xb   :  { %s47_s10 = sshll.u32 %s706_s9, 4  ;;  %s57_s12 = sshll.u32 %s707_s11, 4  ;;  %s48_s10 = int_to_ptr.vmem [resolvable:$true] %s47_s10  ;;  %s58_s12 = int_to_ptr.vmem [resolvable:$true] %s57_s12 }
   0xc   :  { %50 = dma.hbm_to_vmem [thread:$0]  %s46_s1, 32, %s48_s10, [#allocation6]  }
   0xd   :  { %s708_s13 = smov 64   ;;  %s709_s2 = smov 4  }
   0xe   :  { %63 = dma.hbm_to_vmem [thread:$0]  %s56_s8, 2048, %s58_s12, [#allocation9], %s708_s13, %s708_s13, %s709_s2  }
   0xf   :  { %694 = dma.done.wait [#allocation3], 256  }
  0x10   :  { %695 = vsyncadd [#allocation3], 4294967040 }
  0x11   :  { %696 = dma.done.wait [#allocation6], 2080  }
  0x12   :  { %697 = vsyncadd [#allocation6], 4294965216 }
  0x13   :  { %698 = dma.done.wait [#allocation9], 2048  }
  0x14   :  { %699 = vsyncadd [#allocation9], 4294965248  ;;  %v462_v0 = vld [vmem:[#allocation5 + $0x70] sm:$0xf]  ;;  %v547_v1 = vld [vmem:[#allocation5 + $0x74] sm:$0xf0] }
  0x15   :  { %v546_v2 = vld [vmem:[#allocation5 + $0x74] sm:$0xf]  ;;  %v463_v3 = vor.u32 %v547_v1, %v462_v0  ;;  %v464_v4 = vld [vmem:[#allocation5 + $0x78] sm:$0xf0]  ;;  %v454_v5 = vld [vmem:[#allocation5 + $0x60] sm:$0xf] }
  0x16   :  { %v545_v6 = vld [vmem:[#allocation5 + $0x64] sm:$0xf0]  ;;  %v467_v7 = vor.u32 %v546_v2, %v464_v4  ;;  %v544_v8 = vld [vmem:[#allocation5 + $0x64] sm:$0xf]  ;;  %v456_v9 = vld [vmem:[#allocation5 + $0x68] sm:$0xf0] }
  0x17   :  { %187 = vmatpush.bf16.msra.mxu0 %v463_v3  ;;  %v455_v10 = vor.u32 %v545_v6, %v454_v5  ;;  %v459_v11 = vor.u32 %v544_v8, %v456_v9  ;;  %v446_v12 = vld [vmem:[#allocation5 + $0x50] sm:$0xf]  ;;  %v543_v13 = vld [vmem:[#allocation5 + $0x54] sm:$0xf0]  ;;  %v542_v14 = vld [vmem:[#allocation5 + $0x54] sm:$0xf] }
  0x18   :  { %201 = vmatpush.bf16.msra.mxu1 %v467_v7  ;;  %v448_v15 = vld [vmem:[#allocation5 + $0x58] sm:$0xf0]  ;;  %v447_v16 = vor.u32 %v543_v13, %v446_v12  ;;  %v438_v18 = vld [vmem:[#allocation5 + $0x40] sm:$0xf]  ;;  %v541_v19 = vld [vmem:[#allocation5 + $0x44] sm:$0xf0] }
  0x19   :  { %v451_v17 = vor.u32 %v542_v14, %v448_v15  ;;  %v540_v20 = vld [vmem:[#allocation5 + $0x44] sm:$0xf]  ;;  %v440_v21 = vld [vmem:[#allocation5 + $0x48] sm:$0xf0]  ;;  %v439_v22 = vor.u32 %v541_v19, %v438_v18  ;;  %v555_v23 = vld [vmem:[#allocation8 + $0x38] sm:$0xff]  ;;  %s710_s15 = smov [#allocation10]  }
  0x1a   :  { %v563_v24 = vld [vmem:[#allocation8 + $0x78] sm:$0xff]  ;;  %v443_v25 = vor.u32 %v540_v20, %v440_v21  ;;  %v430_v26 = vld [vmem:[#allocation5 + $0x30] sm:$0xf]  ;;  %v538_v28 = vld [vmem:[#allocation5 + $0x34] sm:$0xf]  ;;  %353 = vmatpush.bf16.msra.mxu2 %v555_v23  ;;  %s387_s16 = sshll.u32 %s710_s15, 4  ;;  %s388_s16 = int_to_ptr.vmem [resolvable:$true] %s387_s16 }
  0x1b   :  { %188 = vmatpush.bf16.msra.mxu0 %v455_v10  ;;  %v539_v27 = vld [vmem:[#allocation5 + $0x34] sm:$0xf0]  ;;  %v432_v29 = vld [vmem:[#allocation5 + $0x38] sm:$0xf0]  ;;  %367 = vmatpush.bf16.msra.mxu3 %v563_v24  ;;  %v422_v34 = vld [vmem:[#allocation5 + $0x20] sm:$0xf] }
  0x1c   :  { %202 = vmatpush.bf16.msra.mxu1 %v459_v11  ;;  %v554_v30 = vld [vmem:[#allocation8 + $0x30] sm:$0xff]  ;;  %v431_v32 = vor.u32 %v539_v27, %v430_v26  ;;  %v435_v33 = vor.u32 %v538_v28, %v432_v29  ;;  %v537_v35 = vld [vmem:[#allocation5 + $0x24] sm:$0xf0]  ;;  %v536_v36 = vld [vmem:[#allocation5 + $0x24] sm:$0xf]  ;;  %s389_s19 = sshll.u32 %s773_s5, 4  ;;  %s390_s19 = int_to_ptr.hbm [resolvable:$true] %s389_s19 }
  0x1d   :  { %v562_v31 = vld [vmem:[#allocation8 + $0x70] sm:$0xff]  ;;  %v424_v37 = vld [vmem:[#allocation5 + $0x28] sm:$0xf0]  ;;  %v423_v40 = vor.u32 %v537_v35, %v422_v34  ;;  %v416_v45 = vld [vmem:[#allocation5 + $0x18] sm:$0xf0] }
  0x1e   :  { %354 = vmatpush.bf16.msra.mxu2 %v554_v30  ;;  %v553_v38 = vld [vmem:[#allocation8 + $0x28] sm:$0xff]  ;;  %v427_v41 = vor.u32 %v536_v36, %v424_v37  ;;  %v535_v43 = vld [vmem:[#allocation5 + $0x14] sm:$0xf0]  ;;  %v534_v44 = vld [vmem:[#allocation5 + $0x14] sm:$0xf] }
  0x1f   :  { %189 = vmatpush.bf16.msra.mxu0 %v447_v16  ;;  %368 = vmatpush.bf16.msra.mxu3 %v562_v31  ;;  %v561_v39 = vld [vmem:[#allocation8 + $0x68] sm:$0xff]  ;;  %v552_v46 = vld [vmem:[#allocation8 + $0x20] sm:$0xff]  ;;  %v419_v49 = vor.u32 %v534_v44, %v416_v45  ;;  %v83_v56 = vld [vmem:[#allocation2 + $0x8] sm:$0xff] }
  0x20   :  { %203 = vmatpush.bf16.msra.mxu1 %v451_v17  ;;  %v414_v42 = vld [vmem:[#allocation5 + $0x10] sm:$0xf]  ;;  %v560_v47 = vld [vmem:[#allocation8 + $0x60] sm:$0xff]  ;;  %v408_v53 = vld [vmem:[#allocation5 + $0x8] sm:$0xf0] }
  0x21   :  { %v415_v48 = vor.u32 %v535_v43, %v414_v42  ;;  %v406_v50 = vld [vmem:[#allocation5] sm:$0xf]  ;;  %v533_v51 = vld [vmem:[#allocation5 + $0x4] sm:$0xf0]  ;;  %v532_v52 = vld [vmem:[#allocation5 + $0x4] sm:$0xf] }
  0x22   :  { %355 = vmatpush.bf16.msra.mxu2 %v553_v38  ;;  %v407_v54 = vor.u32 %v533_v51, %v406_v50  ;;  %v82_v55 = vld [vmem:[#allocation2] sm:$0xff]  ;;  %v411_v57 = vor.u32 %v532_v52, %v408_v53  ;;  %v551_v59 = vld [vmem:[#allocation8 + $0x18] sm:$0xff]  ;;  %v548_v1 = vld [vmem:[#allocation8] sm:$0xff] }
  0x23   :  { %190 = vmatpush.bf16.msra.mxu0 %v439_v22  ;;  %369 = vmatpush.bf16.msra.mxu3 %v561_v39  ;;  %v84_v58 = vpack.c.bf16 %v83_v56, %v82_v55  ;;  %v559_v60 = vld [vmem:[#allocation8 + $0x58] sm:$0xff]  ;;  %v550_v61 = vld [vmem:[#allocation8 + $0x10] sm:$0xff]  ;;  %v549_v63 = vld [vmem:[#allocation8 + $0x8] sm:$0xff] }
  0x24   :  { %204 = vmatpush.bf16.msra.mxu1 %v443_v25  ;;  %v558_v62 = vld [vmem:[#allocation8 + $0x50] sm:$0xff]  ;;  %v557_v0 = vld [vmem:[#allocation8 + $0x48] sm:$0xff]  ;;  %v556_v2 = vld [vmem:[#allocation8 + $0x40] sm:$0xff] }
  0x25   :  { %v101_v3 = vld [vmem:[#allocation7] sm:$0x3]  ;;  %v573_v20 = vld [vmem:[%s772_s4] ss:$0 sm:$0xff] }
  0x26   :  { %356 = vmatpush.bf16.msra.mxu2 %v552_v46  ;;  %v103_v6 = vperm.slane %v101_v3, 0  ;;  %v104_v7 = vperm.slane %v101_v3, 1 }
  0x27   :  { %191 = vmatpush.bf16.msra.mxu0 %v431_v32  ;;  %370 = vmatpush.bf16.msra.mxu3 %v560_v47 }
  0x28   :  { %205 = vmatpush.bf16.msra.mxu1 %v435_v33 }
  0x2a   :  { %357 = vmatpush.bf16.msra.mxu2 %v551_v59 }
  0x2b   :  { %192 = vmatpush.bf16.msra.mxu0 %v423_v40  ;;  %371 = vmatpush.bf16.msra.mxu3 %v559_v60 }
  0x2c   :  { %206 = vmatpush.bf16.msra.mxu1 %v427_v41 }
  0x2e   :  { %358 = vmatpush.bf16.msra.mxu2 %v550_v61 }
  0x2f   :  { %193 = vmatpush.bf16.msra.mxu0 %v415_v48  ;;  %372 = vmatpush.bf16.msra.mxu3 %v558_v62 }
  0x30   :  { %207 = vmatpush.bf16.msra.mxu1 %v419_v49 }
  0x32   :  { %359 = vmatpush.bf16.msra.mxu2 %v549_v63 }
  0x33   :  { %194 = vmatpush.bf16.msra.mxu0 %v407_v54  ;;  %373 = vmatpush.bf16.msra.mxu3 %v557_v0 }
  0x34   :  { %208 = vmatpush.bf16.msra.mxu1 %v411_v57 }
  0x36   :  { %195 = vmatmul.bf16.vlgmr.msra.gmra.mxu0 %v84_v58  ;;  %360 = vmatpush.bf16.msra.mxu2 %v548_v1 }
  0x37   :  { %209 = vmatmul.bf16.vlgmr.msra.gmra.mxu1 %v84_v58  ;;  %374 = vmatpush.bf16.msra.mxu3 %v556_v2 }
  0xb3   :  { %v196_v4 = vpop.f32.mrf.mxu0 }
  0xb4   :  { %v210_v5 = vpop.f32.mrf.mxu1  ;;  %v197_v8 = vadd.f32 %v196_v4, %v103_v6 }
  0xb5   :  { %v211_v9 = vadd.f32 %v210_v5, %v104_v7 }
  0xb6   :  { %v215_v14 = vmax.f32 %v197_v8, 0.0 }
  0xb7   :  { %v216_v16 = vmax.f32 %v211_v9, 0.0 }
  0xbb   :  { %v198_v10 = vpop.f32.mrf.mxu0 }
  0xbc   :  { %v199_v11 = vadd.f32 %v198_v10, %v103_v6  ;;  %v212_v12 = vpop.f32.mrf.mxu1 }
  0xbd   :  { %v213_v13 = vadd.f32 %v212_v12, %v104_v7 }
  0xbe   :  { %v217_v15 = vmax.f32 %v199_v11, 0.0 }
  0xbf   :  { %v218_v17 = vmax.f32 %v213_v13, 0.0 }
  0xc0   :  { %v219_v18 = vpack.c.bf16 %v217_v15, %v215_v14 }
  0xc1   :  { %v220_v19 = vpack.c.bf16 %v218_v17, %v216_v16 }
  0xc2   :  { %361 = vmatmul.bf16.vlgmr.msra.gmra.mxu2 %v219_v18 }
  0xc3   :  { %375 = vmatmul.bf16.vlgmr.msra.gmra.mxu3 %v220_v19 }
 0x145   :  { %v362_v21 = vpop.f32.mrf.mxu2 }
 0x146   :  { %v363_v22 = vadd.f32 %v573_v20, %v362_v21  ;;  %v376_v23 = vpop.f32.mrf.mxu3 }
 0x148   :  { %v377_v24 = vadd.f32 %v376_v23, %v363_v22 }
 0x14a   :  { %381 = vst [vmem:[#allocation10] sm:$0xff] %v377_v24 }
 0x14d   :  { %v364_v25 = vpop.f32.mrf.mxu2 }
 0x14e   :  { %v365_v26 = vadd.f32 %v573_v20, %v364_v25  ;;  %v378_v27 = vpop.f32.mrf.mxu3 }
 0x150   :  { %v379_v28 = vadd.f32 %v378_v27, %v365_v26 }
 0x152   :  { %382 = vst [vmem:[#allocation10 + $0x8] sm:$0xff] %v379_v28 }
 0x153   :  { %395 = dma.vmem_to_hbm [thread:$0]  %s388_s16, 256, %s390_s19, [#allocation4], %s703_s26, %s703_s26, %s704_s27  }
 0x154   :  { %700 = dma.done.wait [#allocation4], 256  }
 0x155   :  { %701 = vsyncadd [#allocation4], 4294967040 }
 0x156   :  { %400 = vsyncpa [#allocation3], 1 }
 0x157   :  { %401 = vsyncpa [#allocation6], 1 }
 0x158   :  { %402 = vsyncpa [#allocation9], 1 }
 0x159   :  { %403 = vsyncpa [#allocation4], 1 }

</bundles_post_ra>
